<compile_context>
chip_gen: v5e
topology: v5e:2x2
jax: 0.10.0
libtpu: 0.0.40
codegen_flags: <defaults>
</compile_context>

<pallas_src>
import jax
import jax.numpy as jnp
from jax.experimental import pallas as pl
from jax.experimental.pallas import tpu as pltpu

EPS = 1e-8
MAX_TILE = 256  # square tile edge; safe on v5e (16 MiB scoped), v6e, v7x (64 MiB VMEM)


def _round_up(x, m):
    return ((x + m - 1) // m) * m


def _make_kernel(n_valid, ti, tj, ndim, need_mask):
    """Build the tile kernel. n_valid / ti / tj / ndim are static Python ints."""

    def kernel(rows_ref, cols_ref, out_ref):
        # rows_ref: (1, TI, D)  residual rows for this i-tile
        # cols_ref: (1, D, TJ)  residual (transposed) for this j-tile
        # out_ref : (1, 1, TJ)  per-(batch, j_tile) partial column sums,
        #                       accumulated over the innermost i-tile axis.
        it = pl.program_id(2)

        @pl.when(it == 0)
        def _init():
            out_ref[...] = jnp.zeros_like(out_ref)

        x = rows_ref[0]  # (TI, D)
        y = cols_ref[0]  # (D, TJ)

        # squared pairwise distance of residuals, built per coordinate on the VPU
        sq = jnp.zeros((ti, tj), jnp.float32)
        for c in range(ndim):
            diff = x[:, c:c + 1] - y[c:c + 1, :]  # (TI,1)-(1,TJ) -> (TI,TJ)
            sq = sq + diff * diff

        dist = jnp.sqrt(sq + EPS)

        if need_mask:
            jt = pl.program_id(1)
            row_ids = it * ti + jax.lax.broadcasted_iota(jnp.int32, (ti, 1), 0)
            col_ids = jt * tj + jax.lax.broadcasted_iota(jnp.int32, (1, tj), 1)
            valid = (row_ids < n_valid) & (col_ids < n_valid)  # (TI, TJ)
            dist = jnp.where(valid, dist, 0.0)

        # cross-sublane reduce -> lane-dense (1, TJ) partial, accumulate over i-tiles
        part = jnp.sum(dist, axis=0, keepdims=True)  # (1, TJ)
        out_ref[...] += part[None, :, :]             # (1, 1, TJ)

    return kernel


def coor_loss(pred, label):
    """Pallas TPU equivalent of Coor_loss.forward(pred, label, num_block=None)."""
    assert pred.shape == label.shape
    *lead, N, D = pred.shape
    B = 1
    for s in lead:
        B *= int(s)

    # residual once, in the wrapper; kernel only ever sees d = pred - label
    d = (pred.astype(jnp.float32) - label.astype(jnp.float32)).reshape(B, N, D)

    # tile / padding plan (blocks always satisfy the (8,128)-or-full-dim rule)
    if N <= MAX_TILE:
        n_pad = _round_up(N, 128)
        ti = tj = n_pad
    else:
        ti = tj = MAX_TILE
        n_pad = _round_up(N, MAX_TILE)
    ni = n_pad // ti
    nj = n_pad // tj
    pad = n_pad - N

    rows = jnp.pad(d, ((0, 0), (0, pad), (0, 0)))                       # (B, N_pad, D)
    cols = jnp.pad(jnp.swapaxes(d, 1, 2), ((0, 0), (0, 0), (0, pad)))   # (B, D, N_pad)

    kernel = _make_kernel(N, ti, tj, D, need_mask=(pad > 0))

    out = pl.pallas_call(
        kernel,
        out_shape=jax.ShapeDtypeStruct((B, 1, n_pad), jnp.float32),
        grid_spec=pltpu.PrefetchScalarGridSpec(
            num_scalar_prefetch=0,
            grid=(B, nj, ni),  # i-tile innermost = reduction axis for out block
            in_specs=[
                pl.BlockSpec((1, ti, D), lambda b, jt, it: (b, it, 0)),
                pl.BlockSpec((1, D, tj), lambda b, jt, it: (b, 0, jt)),
            ],
            out_specs=pl.BlockSpec((1, 1, tj), lambda b, jt, it: (b, 0, jt)),
        ),
        compiler_params=pltpu.CompilerParams(
            dimension_semantics=("parallel", "parallel", "arbitrary")),
    )(rows, cols)

    total = jnp.sum(out)  # lane-dense partials reduced in f32 in the wrapper
    return total / (float(B) * float(N) * float(N))


def _reference(pred, label):
    pd = pred[..., :, None, :] - pred[..., None, :, :]
    ld = label[..., :, None, :] - label[..., None, :, :]
    return jnp.mean(jnp.sqrt(jnp.sum((pd - ld) ** 2, axis=-1) + EPS))


if __name__ == "__main__":
    key = jax.random.PRNGKey(0)
    k1, k2, k3, k4 = jax.random.split(key, 4)

    # small shape consistent with the module: batch=2, 16 points, xyz coords
    B, N, D = 2, 16, 3
    pred = jax.random.normal(k1, (B, N, D), dtype=jnp.float32)
    label = jax.random.normal(k2, (B, N, D), dtype=jnp.float32)
    loss = coor_loss(pred, label)
    jax.block_until_ready(loss)
    ref = _reference(pred, label)
    assert jnp.allclose(loss, ref, rtol=1e-5, atol=1e-5), (loss, ref)

    # second check: non-aligned N exercising the multi-tile grid + padding mask
    B2, N2 = 1, 300
    pred2 = jax.random.normal(k3, (B2, N2, D), dtype=jnp.float32)
    label2 = jax.random.normal(k4, (B2, N2, D), dtype=jnp.float32)
    loss2 = coor_loss(pred2, label2)
    jax.block_until_ready(loss2)
    ref2 = _reference(pred2, label2)
    assert jnp.allclose(loss2, ref2, rtol=1e-5, atol=1e-5), (loss2, ref2)

    print("KERNEL_OK")
</pallas_src>

<mosaic_0001>
module attributes {stable_mosaic.version = 11 : i64} {
  func.func @kernel(%arg0: i32, %arg1: i32, %arg2: i32, %arg3: memref<1x128x3xf32, #tpu.memory_space<vmem>>, %arg4: memref<1x3x128xf32, #tpu.memory_space<vmem>>, %arg5: memref<1x1x128xf32, #tpu.memory_space<vmem>>) attributes {dimension_semantics = [#tpu.dimension_semantics<parallel>, #tpu.dimension_semantics<parallel>, #tpu.dimension_semantics<arbitrary>], iteration_bounds = array<i64: 2, 1, 1>, scalar_prefetch = 0 : i64, scratch_operands = 0 : i64, tpu.core_type = #tpu.core_type<tc>, window_params = [{transform_indices = @transform_0, window_bounds = array<i64: 1, 128, 3>}, {transform_indices = @transform_1, window_bounds = array<i64: 1, 3, 128>}, {transform_indices = @transform_2, window_bounds = array<i64: 1, 1, 128>}]} {
    %c0_i32 = arith.constant 0 : i32
    %0 = arith.cmpi eq, %arg2, %c0_i32 : i32
    %1 = arith.extui %0 : i1 to i32
    %c0_i32_0 = arith.constant 0 : i32
    %2 = arith.cmpi ne, %1, %c0_i32_0 : i32
    scf.if %2 {
      %cst_17 = arith.constant 0.000000e+00 : f32
      %55 = vector.broadcast %cst_17 : f32 to vector<1x1x128xf32>
      %c0_18 = arith.constant 0 : index
      %c0_19 = arith.constant 0 : index
      %c0_20 = arith.constant 0 : index
      %56 = vector.load %arg5[%c0_18, %c0_19, %c0_20] : memref<1x1x128xf32, #tpu.memory_space<vmem>>, vector<1x1x128xf32>
      tpu.vector_store %arg5[%c0_18, %c0_19, %c0_20], %55 {strides = array<i32>} : memref<1x1x128xf32, #tpu.memory_space<vmem>>, vector<1x1x128xf32>,
    } else {
    }
    %c0 = arith.constant 0 : index
    %c0_1 = arith.constant 0 : index
    %c0_2 = arith.constant 0 : index
    %3 = vector.load %arg3[%c0, %c0_1, %c0_2] : memref<1x128x3xf32, #tpu.memory_space<vmem>>, vector<1x128x3xf32>
    %4 = vector.shape_cast %3 : vector<1x128x3xf32> to vector<128x3xf32>
    %c0_3 = arith.constant 0 : index
    %c0_4 = arith.constant 0 : index
    %c0_5 = arith.constant 0 : index
    %5 = vector.load %arg4[%c0_3, %c0_4, %c0_5] : memref<1x3x128xf32, #tpu.memory_space<vmem>>, vector<1x3x128xf32>
    %6 = vector.shape_cast %5 : vector<1x3x128xf32> to vector<3x128xf32>
    %cst = arith.constant 0.000000e+00 : f32
    %7 = vector.broadcast %cst : f32 to vector<128x128xf32>
    %8 = vector.extract_strided_slice %4 {offsets = [0, 0], sizes = [128, 1], strides = [1, 1]} : vector<128x3xf32> to vector<128x1xf32>
    %9 = vector.extract_strided_slice %6 {offsets = [0, 0], sizes = [1, 128], strides = [1, 1]} : vector<3x128xf32> to vector<1x128xf32>
    %10 = vector.broadcast %8 : vector<128x1xf32> to vector<128x128xf32>
    %11 = vector.broadcast %9 : vector<1x128xf32> to vector<128x128xf32>
    %12 = arith.subf %10, %11 : vector<128x128xf32>
    %13 = arith.mulf %12, %12 : vector<128x128xf32>
    %14 = arith.addf %7, %13 : vector<128x128xf32>
    %15 = vector.extract_strided_slice %4 {offsets = [0, 1], sizes = [128, 1], strides = [1, 1]} : vector<128x3xf32> to vector<128x1xf32>
    %16 = vector.extract_strided_slice %6 {offsets = [1, 0], sizes = [1, 128], strides = [1, 1]} : vector<3x128xf32> to vector<1x128xf32>
    %17 = vector.broadcast %15 : vector<128x1xf32> to vector<128x128xf32>
    %18 = vector.broadcast %16 : vector<1x128xf32> to vector<128x128xf32>
    %19 = arith.subf %17, %18 : vector<128x128xf32>
    %20 = arith.mulf %19, %19 : vector<128x128xf32>
    %21 = arith.addf %14, %20 : vector<128x128xf32>
    %22 = vector.extract_strided_slice %4 {offsets = [0, 2], sizes = [128, 1], strides = [1, 1]} : vector<128x3xf32> to vector<128x1xf32>
    %23 = vector.extract_strided_slice %6 {offsets = [2, 0], sizes = [1, 128], strides = [1, 1]} : vector<3x128xf32> to vector<1x128xf32>
    %24 = vector.broadcast %22 : vector<128x1xf32> to vector<128x128xf32>
    %25 = vector.broadcast %23 : vector<1x128xf32> to vector<128x128xf32>
    %26 = arith.subf %24, %25 : vector<128x128xf32>
    %27 = arith.mulf %26, %26 : vector<128x128xf32>
    %28 = arith.addf %21, %27 : vector<128x128xf32>
    %cst_6 = arith.constant 9.99999993E-9 : f32
    %29 = vector.broadcast %cst_6 : f32 to vector<128x128xf32>
    %30 = arith.addf %28, %29 : vector<128x128xf32>
    %31 = math.sqrt %30 : vector<128x128xf32>
    %c128_i32 = arith.constant 128 : i32
    %32 = arith.muli %arg2, %c128_i32 : i32
    %33 = tpu.iota {dimensions = array<i32: 0>} : vector<128x1xi32>
    %34 = vector.broadcast %32 : i32 to vector<128x1xi32>
    %35 = arith.addi %34, %33 : vector<128x1xi32>
    %c128_i32_7 = arith.constant 128 : i32
    %36 = arith.muli %arg1, %c128_i32_7 : i32
    %37 = tpu.iota {dimensions = array<i32: 1>} : vector<1x128xi32>
    %38 = vector.broadcast %36 : i32 to vector<1x128xi32>
    %39 = arith.addi %38, %37 : vector<1x128xi32>
    %c16_i32 = arith.constant 16 : i32
    %40 = vector.broadcast %c16_i32 : i32 to vector<128x1xi32>
    %41 = arith.cmpi slt, %35, %40 : vector<128x1xi32>
    %c16_i32_8 = arith.constant 16 : i32
    %42 = vector.broadcast %c16_i32_8 : i32 to vector<1x128xi32>
    %43 = arith.cmpi slt, %39, %42 : vector<1x128xi32>
    %44 = vector.broadcast %41 : vector<128x1xi1> to vector<128x128xi1>
    %45 = vector.broadcast %43 : vector<1x128xi1> to vector<128x128xi1>
    %46 = arith.andi %44, %45 : vector<128x128xi1>
    %cst_9 = arith.constant 0.000000e+00 : f32
    %47 = vector.broadcast %cst_9 : f32 to vector<128x128xf32>
    %48 = arith.select %46, %31, %47 : vector<128x128xi1>, vector<128x128xf32>
    %cst_10 = arith.constant dense<0.000000e+00> : vector<128xf32>
    %49 = vector.multi_reduction <add>, %48, %cst_10 [0] : vector<128x128xf32> to vector<128xf32>
    %50 = vector.shape_cast %49 : vector<128xf32> to vector<1x128xf32>
    %c0_11 = arith.constant 0 : index
    %c0_12 = arith.constant 0 : index
    %c0_13 = arith.constant 0 : index
    %51 = vector.load %arg5[%c0_11, %c0_12, %c0_13] : memref<1x1x128xf32, #tpu.memory_space<vmem>>, vector<1x1x128xf32>
    %52 = vector.shape_cast %50 : vector<1x128xf32> to vector<1x1x128xf32>
    %53 = arith.addf %51, %52 : vector<1x1x128xf32>
    %c0_14 = arith.constant 0 : index
    %c0_15 = arith.constant 0 : index
    %c0_16 = arith.constant 0 : index
    %54 = vector.load %arg5[%c0_14, %c0_15, %c0_16] : memref<1x1x128xf32, #tpu.memory_space<vmem>>, vector<1x1x128xf32>
    tpu.vector_store %arg5[%c0_14, %c0_15, %c0_16], %53 {strides = array<i32>} : memref<1x1x128xf32, #tpu.memory_space<vmem>>, vector<1x1x128xf32>,
    return
  }
  func.func @transform_0(%arg0: i32, %arg1: i32, %arg2: i32) -> (i32, i32, i32) {
    %c0_i32 = arith.constant 0 : i32
    %c0_i32_0 = arith.constant 0 : i32
    return %arg0, %arg2, %c0_i32 : i32, i32, i32
  }
  func.func @transform_1(%arg0: i32, %arg1: i32, %arg2: i32) -> (i32, i32, i32) {
    %c0_i32 = arith.constant 0 : i32
    %c0_i32_0 = arith.constant 0 : i32
    return %arg0, %c0_i32, %arg1 : i32, i32, i32
  }
  func.func @transform_2(%arg0: i32, %arg1: i32, %arg2: i32) -> (i32, i32, i32) {
    %c0_i32 = arith.constant 0 : i32
    %c0_i32_0 = arith.constant 0 : i32
    return %arg0, %c0_i32, %arg1 : i32, i32, i32
  }
}

</mosaic_0001>

<bundles_post_ra>
// kernel: tpu_custom_call.1
= control target key start
LH: loop header
LB: loop body
LE: loop exit
PB: predicated region body
PF: predicated region fallthrough
CT: control target
= control target key end

     0   :  { %7 = vsyncpa [#allocation3], 0  ;;  %s1327_s0 = inlined_call_operand.vmem [shape: f32[2,128,3], index: 0, kind: input, shape index: {}]   ;;  %s1328_s1 = inlined_call_operand.vmem [shape: f32[2,3,128], index: 1, kind: input, shape index: {}]   ;;  %s1329_s2 = inlined_call_operand.hbm [shape: f32[2,1,128], index: 2, kind: output, shape index: {}]  }
   0x1   :  { %9 = vsyncpa [#allocation3 + $0x1], 0  ;;  %s1217_s9 = smov 0   ;;  %s1219_s10 = smov 0  }
   0x2   :  { %s1221_s11 = smov 0   ;;  %s1223_s12 = smov 0  }
   0x3   :  { %s1225_s13 = smov 0   ;;  %s1227_s14 = smov 0  }
   0x4 LB: > { %s1040_s15 = sadd.s32 4294967295, %s1196_s14   ;;  %s1041_s16 = sadd.s32 4294967294, %s1196_s14   ;;  %s1196_s14 = sphi %s1227_s14, %s15_s14   ;;  %s1192_s13 = sphi %s1225_s13, %s1336_s13   ;;  %s1188_s12 = sphi %s1223_s12, %s1335_s12   ;;  %s1184_s11 = sphi %s1221_s11, %s1334_s11   ;;  %s1180_s10 = sphi %s1219_s10, %s1333_s10   ;;  %s1176_s9 = sphi %s1217_s9, %s1332_s9  }
   0x5   : > { %s34_s17 = sadd.s32 1, %s1192_s13  ;;  %s99_s18 = sadd.s32 1, %s1184_s11 }
   0x6   : > { %p36_p0 = scmp.ge.s32.totalorder %s34_s17, 2  ;;  %p109_p1 = scmp.ne.s32.totalorder %s1184_s11, %s1180_s10 }
   0x7   : > { %p110_p2 = scmp.eq.s32.totalorder %s1040_s15, 1  ;;  %p115_p3 = scmp.ne.s32.totalorder %s1180_s10, %s1176_s9 }
   0x8   : > { %s1338_s17 = smov (%p36_p0, %s34_s17), 0  ;;  %p116_p5 = scmp.eq.s32.totalorder %s1041_s16, 1 }
   0x9   : > { %p1257_p4 = por %p110_p2, %p109_p1  ;;  %s94_s20 = ssub.s32 %s1192_s13, %s1338_s17 }
   0xa   : > { %p1044_p6 = scmp.ge.s32.totalorder %s1196_s14, 1  ;;  %p97_p7 = scmp.eq.s32.totalorder %s94_s20, 0 }
   0xb   : > { %p1264_p8 = por %p116_p5, %p115_p3  ;;  %p157_p9 = scmp.lt.s32.totalorder %s1196_s14, 3 }
   0xc   : > { %s1270_s22 = scalar_select %p97_p7, %s1184_s11, %s99_s18  }
   0xd   : > { %p158_p10 = pnand %p1044_p6, %p157_p9 }
   0xe   : > { %p190_p11 = scmp.lt.s32.totalorder (!%p158_p10), %s1188_s12, 1  ;;  %s187_s29 = sand.u32 (!%p158_p10), 1, %s1180_s10  }
   0xf   : > { %161 = sbr.rel (%p158_p10) target bundleno = 199 (0xc7), region = 28  ;;  %s1283_s5 = scalar_lea.vmem (!%p158_p10), [#allocation2], %s187_s29 }
  0x10   : > { %s948_s8 = scalar_lea.hbm (!%p158_p10), %s1329_s2, %s1188_s12  ;;  %s950_s15 = sshll.u32 (!%p158_p10), %s1283_s5, 4  ;;  %s951_s15 = int_to_ptr.vmem [resolvable:$true] %s950_s15 }
  0x11   : > { %s952_s16 = sshll.u32 (!%p158_p10), %s948_s8, 4  ;;  %s939_s18 = scalar_lea.sflag (!%p158_p10), [#allocation3], %s187_s29  ;;  %s953_s16 = int_to_ptr.hbm [resolvable:$true] %s952_s16 }
  0x12   : > { %s1132_s20 = sshra.s32 (!%p158_p10), %s953_s16, 4  ;;  %s1138_s25 = scalar_lea.hbm (!%p158_p10), %s1329_s2, 2  ;;  %s1133_s20 = int_to_ptr.hbm [resolvable:$true] %s1132_s20 }
  0x13   : > { %p1139_p1 = scmp.lt.s32.totalorder (!%p158_p10), %s1133_s20, %s1329_s2 }
  0x14   : > { %v1198_v0 = vmov 1   ;;  %v1199_v1 = vmov 0   ;;  %s191_s23 = scalar_select %p190_p11, %s1188_s12, 1  ;;  %v1200_v2 = vmov 2   ;;  %v1201_v7 = vmov 0.0  }
  0x15   : > { %1111 = vset.pattern.permute.xlu1 %v1198_v0  ;;  %1110 = vset.pattern.permute.xlu0 %v1199_v1  ;;  %210 = vst [vmem:[%s1283_s5] sm:$0x1] %v1201_v7  ;;  %v827_v43 = vlaneseq }
  0x16   : > { %1112 = vset.pattern.permute.xlu2 %v1200_v2  ;;  %s1050_s24 = sshll.u32 %s191_s23, 7  ;;  %s1047_s28 = sshll.u32 %s191_s23, 2 }
  0x17   : > { %s197_s27 = scalar_lea.vmem %s1327_s0, %s1050_s24  ;;  %s205_s4 = scalar_lea.vmem %s1328_s1, %s1047_s28  ;;  %v828_v47 = vand.u32 127, %v827_v43 }
  0x18   : > { %v211_v3 = vld [vmem:[%s197_s27] sm:$0xff]  ;;  %v212_v4 = vld [vmem:[%s197_s27 + $0x8] sm:$0xff]  ;;  %s1134_s23 = scalar_lea.hbm %s1133_s20, 1 }
  0x19   : > { %358 = vperm.xlu1 %1111, %v211_v3   ;;  %230 = vperm.xlu0 %1110, %v211_v3   ;;  %v227_v5 = vld [vmem:[%s205_s4] sm:$0x7]  ;;  %vm847_vm3 = vcmp.lt.s32.totalorder %v828_v47, 16  ;;  %p1135_p12 = scmp.ne.s32.totalorder %s1133_s20, %s1134_s23  ;;  %p1140_p2 = scmp.lt.s32.totalorder %s1138_s25, %s1134_s23 }
  0x1a   : > { %471 = vperm.xlu2 %1112, %v211_v3   ;;  %v534_v6 = vperm.slane %v227_v5, 2  ;;  %v421_v9 = vperm.slane %v227_v5, 1  ;;  %v308_v10 = vperm.slane %v227_v5, 0 }
  0x1b   : > { %p1136_p13 = pnand %p1135_p12, %p1257_p4  ;;  %p1141_p3 = por %p1140_p2, %p1139_p1 }
  0x1c   : > { %v935_v0 = vld [vmem:[%s1283_s5] sm:$0x1] }
  0x1d   : > { %p1137_p0 = pneg %p1136_p13 }
  0x1f   : > { %p1142_p5 = pnand %p1141_p3, %p1137_p0 }
  0x21   : > { %362 = vperm.xlu1 %1111, %v212_v4   ;;  %235 = vperm.xlu0 %1110, %v212_v4  }
  0x22   : > { %475 = vperm.xlu2 %1112, %v212_v4  }
  0x29   : > { %1113 = vset.pattern.permute.xlu0 %v1200_v2 }
  0x74   : > { %v472_v8 = vpop.permute.xlu2 %471 }
  0x75   : > { %v535_v11 = vsub.f32 %v472_v8, %v534_v6 }
  0x77   : > { %v551_v16 = vmul.f32 %v535_v11, %v535_v11 }
  0x7c   : > { %v476_v20 = vpop.permute.xlu2 %475 }
  0x7d   : > { %v536_v25 = vsub.f32 %v476_v20, %v534_v6 }
  0x7f   : > { %v552_v30 = vmul.f32 %v536_v25, %v536_v25 }
  0x8b   : > { %v359_v12 = vpop.permute.xlu1 %358  ;;  %v231_v13 = vpop.permute.xlu0 %230 }
  0x8c   : > { %v422_v14 = vsub.f32 %v359_v12, %v421_v9  ;;  %v309_v15 = vsub.f32 %v231_v13, %v308_v10 }
  0x8e   : > { %v438_v17 = vmul.f32 %v422_v14, %v422_v14  ;;  %v325_v18 = vmul.f32 %v309_v15, %v309_v15 }
  0x90   : > { %v454_v19 = vadd.f32 %v438_v17, %v325_v18 }
  0x92   : > { %v567_v21 = vadd.f32 %v551_v16, %v454_v19 }
  0x93   : > { %v363_v22 = vpop.permute.xlu1 %362  ;;  %v236_v23 = vpop.permute.xlu0 %235 }
  0x94   : > { %v583_v24 = vadd.f32 1e-08, %v567_v21  ;;  %v423_v26 = vsub.f32 %v363_v22, %v421_v9  ;;  %v310_v27 = vsub.f32 %v236_v23, %v308_v10 }
  0x96   : > { %1114 = vrsqrt.f32 %v583_v24  ;;  %v439_v28 = vmul.f32 %v423_v26, %v423_v26  ;;  %v326_v29 = vmul.f32 %v310_v27, %v310_v27  ;;  %vm606_vm0 = vcmp.eq.f32.partialorder %v583_v24, inf }
  0x97   : > { %v609_v50 = vand.u32 2147483648, %v583_v24  ;;  %vm608_vm1 = vcmp.eq.f32.partialorder %v583_v24, 0.0 }
  0x98   : > { %v455_v31 = vadd.f32 %v439_v28, %v326_v29 }
  0x9a   : > { %v568_v32 = vadd.f32 %v552_v30, %v455_v31 }
  0x9c   : > { %v1115_v33 = vpop.eup %1114  ;;  %v584_v34 = vadd.f32 1e-08, %v568_v32 }
  0x9d   : > { %v600_v35 = vmul.f32 %v1115_v33, %v583_v24 }
  0x9e   : > { %1116 = vrsqrt.f32 %v584_v34  ;;  %vm618_vm2 = vcmp.eq.f32.partialorder %v584_v34, inf  ;;  %v621_v53 = vand.u32 2147483648, %v584_v34  ;;  %vm620_vm4 = vcmp.eq.f32.partialorder %v584_v34, 0.0 }
  0x9f   : > { %v601_v36 = vmul.f32 %v1115_v33, %v600_v35 }
  0xa1   : > { %v602_v37 = vmul.f32 0.5, %v601_v36 }
  0xa3   : > { %v603_v38 = vsub.f32 1.5, %v602_v37 }
  0xa4   : > { %v1117_v39 = vpop.eup %1116 }
  0xa5   : > { %v612_v40 = vmul.f32 %v1117_v39, %v584_v34  ;;  %v604_v41 = vmul.f32 %v1115_v33, %v603_v38 }
  0xa7   : > { %v613_v42 = vmul.f32 %v1117_v39, %v612_v40  ;;  %v605_v44 = vmul.f32 %v604_v41, %v583_v24 }
  0xa9   : > { %v614_v45 = vmul.f32 0.5, %v613_v42  ;;  %v607_v48 = vsel %vm606_vm0, %v583_v24, %v605_v44 }
  0xaa   : > { %v610_v52 = vsel %vm608_vm1, %v609_v50, %v607_v48 }
  0xab   : > { %v615_v46 = vsub.f32 1.5, %v614_v45  ;;  %v898_v56 = vsel %vm847_vm3, %v610_v52, 0.0 }
  0xad   : > { %v616_v49 = vmul.f32 %v1117_v39, %v615_v46 }
  0xaf   : > { %v617_v51 = vmul.f32 %v616_v49, %v584_v34 }
  0xb1   : > { %v619_v54 = vsel %vm618_vm2, %v584_v34, %v617_v51 }
  0xb2   : > { %v622_v55 = vsel %vm620_vm4, %v621_v53, %v619_v54 }
  0xb3   : > { %v899_v57 = vsel %vm847_vm3, %v622_v55, 0.0 }
  0xb4   : > { %v914_v58 = vadd.f32 %v899_v57, %v898_v56 }
  0xb6   : > { %v929_v59 = vrot.slane %v914_v58, 4 }
  0xb8   : > { %v930_v60 = vadd.f32 %v929_v59, %v914_v58 }
  0xba   : > { %v931_v61 = vrot.slane %v930_v60, 2 }
  0xbc   : > { %v932_v62 = vadd.f32 %v931_v61, %v930_v60 }
  0xbe   : > { %v933_v63 = vrot.slane %v932_v62, 1 }
  0xc0   : > { %v934_v1 = vadd.f32 %v933_v63, %v932_v62 }
  0xc2   : > { %v936_v2 = vadd.f32 %v935_v0, %v934_v1 }
  0xc4   : > { %937 = vst [vmem:[%s1283_s5] sm:$0x1] %v936_v2 }
  0xc5   : > { %1145 = shalt.err (!%p1142_p5)
}
  0xc6   : > { %1051 = dma.vmem_to_hbm [thread:$0]  (%p1257_p4), %s951_s15, 16, %s953_s16, %s939_s18  }
  0xc7 PF: > { %p1057_p6 = scmp.ge.s32.totalorder %s1196_s14, 2  ;;  %s964_s28 = sand.u32 1, %s1176_s9  }
  0xc8   : > { %s965_s29 = scalar_lea.sflag [#allocation3], %s964_s28 }
  0xc9   : > { %p1054_p7 = pnand %p1057_p6, %p1264_p8 }
  0xcb   : > { %p1055_p9 = pneg %p1054_p7 }
  0xcd   : > { %1171 = dma.done.wait (%p1055_p9), %s965_s29, 16  }
  0xce   : > { %1173 = vsyncadd (%p1055_p9), %s965_s29, 4294967280  ;;  %s15_s14 = sadd.s32 1, %s1196_s14   ;;  %s1332_s9 = smov %s1180_s10 }
  0xcf   : > { %p12_p10 = scmp.ge.s32.totalorder %s15_s14, 4   ;;  %s1333_s10 = smov %s1184_s11 }
  0xd0   : > { %s1334_s11 = smov %s1270_s22  ;;  %s1335_s12 = smov %s1192_s13 }
  0xd1   : > { %s1336_s13 = smov %s1338_s17  ;;  %14 = sbr.rel (!%p12_p10) target bundleno = 4 (0x4), region = 70 }
  0xd6   :  { %970 = vsyncpa [#allocation3], 1 }
  0xd7   :  { %972 = vsyncpa [#allocation3 + $0x1], 1 }

</bundles_post_ra>
